<compile_context>
chip_gen: v6e
topology: v6e:2x2x1
jax: 0.10.0
libtpu: 0.0.40
codegen_flags: <defaults>
</compile_context>

<pallas_src>
import jax
import jax.numpy as jnp
from jax.experimental import pallas as pl
from jax.experimental.pallas import tpu as pltpu

HIDDEN_LAYER = 128
_NEG_INF = -1e30


def _round_up(v, m):
    return (v + m - 1) // m * m


# ---------------------------------------------------------------------------
# Kernel 1: node projection h = x @ W  and attention coefficients alpha = h @ A
# ---------------------------------------------------------------------------
def _project_kernel(x_ref, w_ref, a_ref, h_ref, alpha_ref):
    x = x_ref[...].astype(jnp.bfloat16)                                  # [tr, Fin]
    w = w_ref[...].astype(jnp.bfloat16)                                  # [Fin, H]
    h = jnp.dot(x, w, preferred_element_type=jnp.float32)                # [tr, H] f32
    h_ref[...] = h.astype(jnp.bfloat16)
    # alpha[:, 0] = h . a_dst , alpha[:, 1] = h . a_src  (tiny matmul, keep f32)
    alpha_ref[...] = jnp.dot(h, a_ref[...], preferred_element_type=jnp.float32)


# ---------------------------------------------------------------------------
# Kernel 2: tiled GAT attention (online softmax) + ReLU + fused 3-head sigmoid
# ---------------------------------------------------------------------------
def _attn_kernel(ad_ref, as_ref, bias_ref, h_ref, bg_ref, wh_ref, bh_ref,
                 out_ref, m_sc, l_sc, acc_sc):
    j = pl.program_id(1)

    @pl.when(j == 0)
    def _():
        m_sc[...] = jnp.full_like(m_sc, -jnp.inf)
        l_sc[...] = jnp.zeros_like(l_sc)
        acc_sc[...] = jnp.zeros_like(acc_sc)

    # e[i, j] = LeakyReLU(alpha_dst[i] + alpha_src[j]) + bias[i, j]
    s = ad_ref[...] + as_ref[...]                      # [tq,1] + [1,tk] -> [tq,tk]
    s = jnp.maximum(s, 0.2 * s)                        # LeakyReLU(0.2)
    s = s + bias_ref[...]                              # 0 on edges, -1e30 elsewhere

    m_prev = m_sc[...]
    m_new = jnp.maximum(m_prev, jnp.max(s, axis=-1, keepdims=True))
    a = jnp.exp(m_prev - m_new)                        # rescale of old state
    p = jnp.exp(s - m_new)                             # masked entries underflow to 0
    l_sc[...] = a * l_sc[...] + jnp.sum(p, axis=-1, keepdims=True)
    acc_sc[...] = a * acc_sc[...] + jnp.dot(
        p.astype(jnp.bfloat16), h_ref[...], preferred_element_type=jnp.float32)
    m_sc[...] = m_new

    @pl.when(j == pl.num_programs(1) - 1)
    def _():
        emb = acc_sc[...] * pl.reciprocal(l_sc[...], approx=True) + bg_ref[...]
        emb = jnp.maximum(emb, 0.0)                    # ReLU
        z = jnp.dot(emb, wh_ref[...], preferred_element_type=jnp.float32) + bh_ref[...]
        out_ref[...] = jax.nn.sigmoid(z)               # [tq, 3]


# ---------------------------------------------------------------------------
# Wrapper
# ---------------------------------------------------------------------------
def state_model_forward(x, edge_index, params):
    """x: [N, F_in] float32, edge_index: [2, E] int32 (row0=src, row1=dst)."""
    n, fin = x.shape
    H = HIDDEN_LAYER

    # Tile sizes (multiples of (8,128)); modest tiles also fit v7x's 64 MiB VMEM.
    if n <= 256:
        n_pad = _round_up(max(n, 1), 128)
        tq = tk = n_pad
    else:
        n_pad = _round_up(n, 512)
        tq, tk = 256, 512
    tr = min(256, n_pad)

    # Glue: additive edge-bias mask (0 on edges & self-loops, -1e30 elsewhere).
    src, dst = edge_index[0], edge_index[1]
    diag = jnp.arange(n_pad)
    bias = jnp.full((n_pad, n_pad), _NEG_INF, jnp.float32)
    bias = bias.at[diag, diag].set(0.0)                # self-loops (incl. pad rows)
    bias = bias.at[dst, src].set(0.0)

    x_pad = jnp.zeros((n_pad, fin), jnp.float32).at[:n, :].set(x)

    # Fused attention vectors [H, 2] and fused heads [H, 3] / [1, 3].
    a_cat = jnp.concatenate([params["a_dst"], params["a_src"].T], axis=1)
    w_heads = jnp.concatenate(
        [params["w_cpu"], params["w_mem"], params["w_p90"]], axis=1)
    b_heads = jnp.concatenate(
        [params["b_cpu"], params["b_mem"], params["b_p90"]], axis=1)

    # ---- Kernel 1: projection (row-tiled) --------------------------------
    h, alpha = pl.pallas_call(
        _project_kernel,
        out_shape=(jax.ShapeDtypeStruct((n_pad, H), jnp.bfloat16),
                   jax.ShapeDtypeStruct((n_pad, 2), jnp.float32)),
        grid_spec=pltpu.PrefetchScalarGridSpec(
            num_scalar_prefetch=0,
            grid=(n_pad // tr,),
            in_specs=[
                pl.BlockSpec((tr, fin), lambda i: (i, 0)),   # x rows
                pl.BlockSpec((fin, H), lambda i: (0, 0)),    # W_gat
                pl.BlockSpec((H, 2), lambda i: (0, 0)),      # [a_dst | a_src]
            ],
            out_specs=[
                pl.BlockSpec((tr, H), lambda i: (i, 0)),     # h (bf16)
                pl.BlockSpec((tr, 2), lambda i: (i, 0)),     # alpha
            ]),
        compiler_params=pltpu.CompilerParams(dimension_semantics=("parallel",)),
    )(x_pad, params["w_gat"], a_cat)

    alpha_dst = alpha[:, 0:1]                                # [N_pad, 1]
    alpha_src_row = alpha[:, 1:2].T                          # [1, N_pad]

    # ---- Kernel 2: tiled attention + aggregation + fused heads -----------
    out = pl.pallas_call(
        _attn_kernel,
        out_shape=jax.ShapeDtypeStruct((n_pad, 3), jnp.float32),
        grid_spec=pltpu.PrefetchScalarGridSpec(
            num_scalar_prefetch=0,
            grid=(n_pad // tq, n_pad // tk),
            in_specs=[
                pl.BlockSpec((tq, 1), lambda i, j: (i, 0)),    # alpha_dst tile
                pl.BlockSpec((1, tk), lambda i, j: (0, j)),    # alpha_src row tile
                pl.BlockSpec((tq, tk), lambda i, j: (i, j)),   # edge-bias tile
                pl.BlockSpec((tk, H), lambda i, j: (j, 0)),    # h src tile (bf16)
                pl.BlockSpec((1, H), lambda i, j: (0, 0)),     # b_gat
                pl.BlockSpec((H, 3), lambda i, j: (0, 0)),     # fused head weights
                pl.BlockSpec((1, 3), lambda i, j: (0, 0)),     # fused head biases
            ],
            out_specs=pl.BlockSpec((tq, 3), lambda i, j: (i, 0)),
            scratch_shapes=[
                pltpu.VMEM((tq, 1), jnp.float32),   # running max
                pltpu.VMEM((tq, 1), jnp.float32),   # running denom
                pltpu.VMEM((tq, H), jnp.float32),   # output accumulator
            ]),
        compiler_params=pltpu.CompilerParams(
            dimension_semantics=("parallel", "arbitrary")),
    )(alpha_dst, alpha_src_row, bias, h,
      params["b_gat"], w_heads, b_heads)

    out = out[:n]
    return out[:, 0:1], out[:, 1:2], out[:, 2:3]


def init_params(key, in_channels):
    ks = jax.random.split(key, 6)
    H = HIDDEN_LAYER
    return {
        # GAT cell parameters
        "w_gat": 0.1 * jax.random.normal(ks[0], (in_channels, H), jnp.float32),
        "b_gat": jnp.zeros((1, H), jnp.float32),
        "a_src": 0.1 * jax.random.normal(ks[1], (1, H), jnp.float32),
        "a_dst": 0.1 * jax.random.normal(ks[2], (H, 1), jnp.float32),
        # predictor heads: init.normal_(weight, std=0.01), zero bias
        "w_cpu": 0.01 * jax.random.normal(ks[3], (H, 1), jnp.float32),
        "b_cpu": jnp.zeros((1, 1), jnp.float32),
        "w_mem": 0.01 * jax.random.normal(ks[4], (H, 1), jnp.float32),
        "b_mem": jnp.zeros((1, 1), jnp.float32),
        "w_p90": 0.01 * jax.random.normal(ks[5], (H, 1), jnp.float32),
        "b_p90": jnp.zeros((1, 1), jnp.float32),
    }


if __name__ == "__main__":
    N, IN_CHANNELS, E = 8, 4, 16
    key = jax.random.PRNGKey(0)
    kx, ke, kp = jax.random.split(key, 3)

    x = jax.random.normal(kx, (N, IN_CHANNELS), jnp.float32)
    edge_index = jax.random.randint(ke, (2, E), 0, N, jnp.int32)
    params = init_params(kp, IN_CHANNELS)

    cpu, mem, p90 = state_model_forward(x, edge_index, params)
    jax.block_until_ready((cpu, mem, p90))
    assert cpu.shape == (N, 1) and mem.shape == (N, 1) and p90.shape == (N, 1)
    assert bool(jnp.all(jnp.isfinite(cpu)) & jnp.all(jnp.isfinite(mem))
                & jnp.all(jnp.isfinite(p90)))
    print("KERNEL_OK")
</pallas_src>

<mosaic_0001>
module attributes {stable_mosaic.version = 11 : i64} {
  func.func @_project_kernel(%arg0: i32, %arg1: memref<128x4xf32, #tpu.memory_space<vmem>>, %arg2: memref<4x128xf32, #tpu.memory_space<vmem>>, %arg3: memref<128x2xf32, #tpu.memory_space<vmem>>, %arg4: memref<128x128xbf16, #tpu.memory_space<vmem>>, %arg5: memref<128x2xf32, #tpu.memory_space<vmem>>) attributes {dimension_semantics = [#tpu.dimension_semantics<parallel>], iteration_bounds = array<i64: 1>, scalar_prefetch = 0 : i64, scratch_operands = 0 : i64, tpu.core_type = #tpu.core_type<tc>, window_params = [{transform_indices = @transform_0, window_bounds = array<i64: 128, 4>}, {pipeline_mode = #tpu.pipeline_mode<synchronous>, transform_indices = @transform_1, window_bounds = array<i64: 4, 128>}, {pipeline_mode = #tpu.pipeline_mode<synchronous>, transform_indices = @transform_2, window_bounds = array<i64: 128, 2>}, {transform_indices = @transform_3, window_bounds = array<i64: 128, 128>}, {transform_indices = @transform_4, window_bounds = array<i64: 128, 2>}]} {
    %c0 = arith.constant 0 : index
    %c0_0 = arith.constant 0 : index
    %0 = vector.load %arg1[%c0, %c0_0] : memref<128x4xf32, #tpu.memory_space<vmem>>, vector<128x4xf32>
    %1 = arith.truncf %0 : vector<128x4xf32> to vector<128x4xbf16>
    %c0_1 = arith.constant 0 : index
    %c0_2 = arith.constant 0 : index
    %2 = vector.load %arg2[%c0_1, %c0_2] : memref<4x128xf32, #tpu.memory_space<vmem>>, vector<4x128xf32>
    %3 = arith.truncf %2 : vector<4x128xf32> to vector<4x128xbf16>
    %cst = arith.constant dense<0.000000e+00> : vector<128x128xf32>
    %4 = tpu.matmul %1, %3, %cst {dimension_numbers = #tpu.dot_dimension_numbers<[1], [0], [0], [1], [0, 0, 1, 1], [], []>} : vector<128x4xbf16>, vector<4x128xbf16>, vector<128x128xf32> -> vector<128x128xf32>
    %5 = arith.truncf %4 : vector<128x128xf32> to vector<128x128xbf16>
    %c0_3 = arith.constant 0 : index
    %c0_4 = arith.constant 0 : index
    %6 = vector.load %arg4[%c0_3, %c0_4] : memref<128x128xbf16, #tpu.memory_space<vmem>>, vector<128x128xbf16>
    tpu.vector_store %arg4[%c0_3, %c0_4], %5 {strides = array<i32>} : memref<128x128xbf16, #tpu.memory_space<vmem>>, vector<128x128xbf16>,
    %c0_5 = arith.constant 0 : index
    %c0_6 = arith.constant 0 : index
    %7 = vector.load %arg3[%c0_5, %c0_6] : memref<128x2xf32, #tpu.memory_space<vmem>>, vector<128x2xf32>
    %cst_7 = arith.constant dense<0.000000e+00> : vector<128x2xf32>
    %8 = tpu.matmul %4, %7, %cst_7 {dimension_numbers = #tpu.dot_dimension_numbers<[1], [0], [0], [1], [0, 0, 1, 1], [], []>} : vector<128x128xf32>, vector<128x2xf32>, vector<128x2xf32> -> vector<128x2xf32>
    %c0_8 = arith.constant 0 : index
    %c0_9 = arith.constant 0 : index
    %9 = vector.load %arg5[%c0_8, %c0_9] : memref<128x2xf32, #tpu.memory_space<vmem>>, vector<128x2xf32>
    tpu.vector_store %arg5[%c0_8, %c0_9], %8 {strides = array<i32>} : memref<128x2xf32, #tpu.memory_space<vmem>>, vector<128x2xf32>,
    return
  }
  func.func @transform_0(%arg0: i32) -> (i32, i32) {
    %c0_i32 = arith.constant 0 : i32
    %c0_i32_0 = arith.constant 0 : i32
    return %arg0, %c0_i32 : i32, i32
  }
  func.func @transform_1(%arg0: i32) -> (i32, i32) {
    %c0_i32 = arith.constant 0 : i32
    %c0_i32_0 = arith.constant 0 : i32
    %c0_i32_1 = arith.constant 0 : i32
    return %c0_i32, %c0_i32_0 : i32, i32
  }
  func.func @transform_2(%arg0: i32) -> (i32, i32) {
    %c0_i32 = arith.constant 0 : i32
    %c0_i32_0 = arith.constant 0 : i32
    %c0_i32_1 = arith.constant 0 : i32
    return %c0_i32, %c0_i32_0 : i32, i32
  }
  func.func @transform_3(%arg0: i32) -> (i32, i32) {
    %c0_i32 = arith.constant 0 : i32
    %c0_i32_0 = arith.constant 0 : i32
    return %arg0, %c0_i32 : i32, i32
  }
  func.func @transform_4(%arg0: i32) -> (i32, i32) {
    %c0_i32 = arith.constant 0 : i32
    %c0_i32_0 = arith.constant 0 : i32
    return %arg0, %c0_i32 : i32, i32
  }
}

</mosaic_0001>

<bundles_post_ra>
// kernel: tpu_custom_call.1
= control target key start
LH: loop header
LB: loop body
LE: loop exit
PB: predicated region body
PF: predicated region fallthrough
CT: control target
= control target key end

     0   :  { %vm69_vm0 = vcmask 1041408   ;;  %vm44_vm1 = vcmask 31744   ;;  %s910_s0 = inlined_call_operand.vmem [shape: f32[128,4], index: 0, kind: input, shape index: {}]   ;;  %s911_s1 = inlined_call_operand.vmem [shape: f32[4,128], index: 1, kind: input, shape index: {}]   ;;  %s912_s2 = inlined_call_operand.vmem [shape: f32[128,2], index: 2, kind: input, shape index: {}]   ;;  %s913_s3 = inlined_call_operand.hbm [shape: bf16[128,128], index: 3, kind: output, shape index: {0}]   ;;  %s914_s4 = inlined_call_operand.vmem [shape: f32[128,2], index: 4, kind: output, shape index: {1}]  }
   0x1   :  { %v42_v0 = vld [vmem:[%s911_s1] sm:$0xf]  ;;  %v19_v2 = vld [vmem:[%s910_s0 + $0x8] sm:$0xff]  ;;  %v20_v5 = vld [vmem:[%s910_s0 + $0x10] sm:$0xff] }
   0x2   :  { %v18_v1 = vld [vmem:[%s910_s0] sm:$0xff]  ;;  %v43_v3 = vpack.c.bf16 %v42_v0, %v42_v0  ;;  %v21_v6 = vld [vmem:[%s910_s0 + $0x18] sm:$0xff]  ;;  %v23_v8 = vld [vmem:[%s910_s0 + $0x28] sm:$0xff] }
   0x3   :  { %v34_v4 = vpack.c.bf16 %v19_v2, %v18_v1  ;;  %v22_v7 = vld [vmem:[%s910_s0 + $0x20] sm:$0xff]  ;;  %v35_v10 = vpack.c.bf16 %v21_v6, %v20_v5  ;;  %v265_v12 = vld [vmem:[%s912_s2 + $0x78] sm:$0xff]  ;;  %v264_v13 = vld [vmem:[%s912_s2 + $0x70] sm:$0xff] }
   0x4   :  { %682 = vmatprep.subr.msk.bf16.mxu0 %vm69_vm0, %v43_v3  ;;  %v71_v9 = vsel %vm69_vm0, %v43_v3, 0  ;;  %v36_v11 = vpack.c.bf16 %v23_v8, %v22_v7  ;;  %650 = vmatprep.subr.mxu1 %v265_v12  ;;  %v24_v14 = vld [vmem:[%s910_s0 + $0x30] sm:$0xff]  ;;  %v25_v15 = vld [vmem:[%s910_s0 + $0x38] sm:$0xff]  ;;  %v263_v16 = vld [vmem:[%s912_s2 + $0x68] sm:$0xff] }
   0x5   :  { %578 = vmatprep.mubr.msk.bf16.mxu0 %vm44_vm1, %v34_v4  ;;  %577 = vmatpush3.bf16.msra.mxu0 %v71_v9  ;;  %v26_v17 = vld [vmem:[%s910_s0 + $0x40] sm:$0xff]  ;;  %v27_v18 = vld [vmem:[%s910_s0 + $0x48] sm:$0xff] }
   0x6   :  { %594 = vmatprep.subr.mxu0 %v265_v12  ;;  %666 = vmatpush3.msra.mxu1 %v265_v12  ;;  %v262_v19 = vld [vmem:[%s912_s2 + $0x60] sm:$0xff] }
   0x7   :  { %651 = vmatprep.subr.mxu1 %v264_v13 }
   0x8   :  { %579 = vmatmul.mubr.msk.bf16.vlgmr.msra.gmra.mxu0 %vm44_vm1, %v35_v10  ;;  %667 = vmatpush3.msra.mxu1 %v264_v13 }
   0x9   :  { %582 = vmatprep.mubr.msk.bf16.mxu0 %vm44_vm1, %v36_v11  ;;  %595 = vmatpush3.msra.mxu0 %v265_v12 }
   0xa   :  { %596 = vmatprep.subr.mxu0 %v264_v13 }
   0xb   :  { %597 = vmatpush3.msra.mxu0 %v264_v13 }
   0xc   :  { %10 = vsyncpa [#allocation3], 0  ;;  %v37_v20 = vpack.c.bf16 %v25_v15, %v24_v14  ;;  %598 = vmatprep.subr.mxu0 %v263_v16  ;;  %652 = vmatprep.subr.mxu1 %v263_v16  ;;  %v38_v21 = vpack.c.bf16 %v27_v18, %v26_v17  ;;  %v261_v22 = vld [vmem:[%s912_s2 + $0x58] sm:$0xff]  ;;  %v260_v23 = vld [vmem:[%s912_s2 + $0x50] sm:$0xff] }
   0xd   :  { %599 = vmatpush3.msra.mxu0 %v263_v16  ;;  %668 = vmatpush3.msra.mxu1 %v263_v16  ;;  %v28_v24 = vld [vmem:[%s910_s0 + $0x50] sm:$0xff]  ;;  %v29_v25 = vld [vmem:[%s910_s0 + $0x58] sm:$0xff]  ;;  %v259_v26 = vld [vmem:[%s912_s2 + $0x48] sm:$0xff] }
   0xe   :  { %600 = vmatprep.subr.mxu0 %v262_v19  ;;  %653 = vmatprep.subr.mxu1 %v262_v19  ;;  %v30_v27 = vld [vmem:[%s910_s0 + $0x60] sm:$0xff]  ;;  %v31_v28 = vld [vmem:[%s910_s0 + $0x68] sm:$0xff]  ;;  %v39_v30 = vpack.c.bf16 %v29_v25, %v28_v24  ;;  %v257_v32 = vld [vmem:[%s912_s2 + $0x38] sm:$0xff] }
   0xf   :  { %601 = vmatpush3.msra.mxu0 %v262_v19  ;;  %669 = vmatpush3.msra.mxu1 %v262_v19  ;;  %v258_v29 = vld [vmem:[%s912_s2 + $0x40] sm:$0xff]  ;;  %v40_v31 = vpack.c.bf16 %v31_v28, %v30_v27  ;;  %v256_v33 = vld [vmem:[%s912_s2 + $0x30] sm:$0xff]  ;;  %v33_v35 = vld [vmem:[%s910_s0 + $0x78] sm:$0xff] }
  0x10   :  { %583 = vmatmul.mubr.msk.bf16.gmra.mxu0 %vm44_vm1, %v37_v20  ;;  %602 = vmatprep.subr.mxu0 %v261_v22  ;;  %v32_v34 = vld [vmem:[%s910_s0 + $0x70] sm:$0xff]  ;;  %v255_v36 = vld [vmem:[%s912_s2 + $0x28] sm:$0xff]  ;;  %v254_v37 = vld [vmem:[%s912_s2 + $0x20] sm:$0xff] }
  0x11   :  { %586 = vmatprep.mubr.msk.bf16.mxu0 %vm44_vm1, %v38_v21  ;;  %603 = vmatpush3.msra.mxu0 %v261_v22  ;;  %v41_v38 = vpack.c.bf16 %v33_v35, %v32_v34  ;;  %v253_v39 = vld [vmem:[%s912_s2 + $0x18] sm:$0xff]  ;;  %v252_v40 = vld [vmem:[%s912_s2 + $0x10] sm:$0xff]  ;;  %v251_v41 = vld [vmem:[%s912_s2 + $0x8] sm:$0xff] }
  0x12   :  { %604 = vmatprep.subr.mxu0 %v260_v23  ;;  %654 = vmatprep.subr.mxu1 %v261_v22  ;;  %v250_v42 = vld [vmem:[%s912_s2] sm:$0xff]  ;;  %s708_s2 = smov [#allocation2]  }
  0x13   :  { %605 = vmatpush3.msra.mxu0 %v260_v23  ;;  %670 = vmatpush3.msra.mxu1 %v261_v22  ;;  %s433_s25 = sshll.u32 %s708_s2, 4  ;;  %s434_s25 = int_to_ptr.vmem [resolvable:$true] %s433_s25 }
  0x14   :  { %606 = vmatprep.subr.mxu0 %v259_v26  ;;  %655 = vmatprep.subr.mxu1 %v260_v23  ;;  %s686_s26 = scalar_lea.vmem %s434_s25, 1024  ;;  %p691_p1 = scmp.lt.s32.totalorder %s434_s25, %s434_s25 }
  0x15   :  { %607 = vmatpush3.msra.mxu0 %v259_v26  ;;  %671 = vmatpush3.msra.mxu1 %v260_v23  ;;  %p687_p0 = scmp.ne.s32.totalorder %s434_s25, %s686_s26  ;;  %p692_p2 = scmp.lt.s32.totalorder %s686_s26, %s686_s26 }
  0x16   :  { %608 = vmatprep.subr.mxu0 %v258_v29  ;;  %656 = vmatprep.subr.mxu1 %v259_v26 }
  0x17   :  { %609 = vmatpush3.msra.mxu0 %v258_v29  ;;  %672 = vmatpush3.msra.mxu1 %v259_v26  ;;  %p693_p3 = por %p692_p2, %p691_p1 }
  0x18   :  { %587 = vmatmul.mubr.msk.bf16.gmra.mxu0 %vm44_vm1, %v39_v30  ;;  %610 = vmatprep.subr.mxu0 %v257_v32 }
  0x19   :  { %590 = vmatprep.mubr.msk.bf16.mxu0 %vm44_vm1, %v40_v31  ;;  %611 = vmatpush3.msra.mxu0 %v257_v32  ;;  %p694_p4 = pnand %p693_p3, %p687_p0 }
  0x1a   :  { %612 = vmatprep.subr.mxu0 %v256_v33  ;;  %657 = vmatprep.subr.mxu1 %v258_v29 }
  0x1b   :  { %613 = vmatpush3.msra.mxu0 %v256_v33  ;;  %673 = vmatpush3.msra.mxu1 %v258_v29 }
  0x1c   :  { %614 = vmatprep.subr.mxu0 %v255_v36  ;;  %658 = vmatprep.subr.mxu1 %v257_v32 }
  0x1d   :  { %615 = vmatpush3.msra.mxu0 %v255_v36  ;;  %674 = vmatpush3.msra.mxu1 %v257_v32 }
  0x1e   :  { %616 = vmatprep.subr.mxu0 %v254_v37  ;;  %659 = vmatprep.subr.mxu1 %v256_v33 }
  0x1f   :  { %617 = vmatpush3.msra.mxu0 %v254_v37  ;;  %675 = vmatpush3.msra.mxu1 %v256_v33 }
  0x20   :  { %591 = vmatmul.mubr.msk.bf16.gmra.mxu0 %vm44_vm1, %v41_v38  ;;  %618 = vmatprep.subr.mxu0 %v253_v39 }
  0x21   :  { %619 = vmatpush3.msra.mxu0 %v253_v39  ;;  %660 = vmatprep.subr.mxu1 %v255_v36 }
  0x22   :  { %676 = vmatpush3.msra.mxu1 %v255_v36  ;;  %620 = vmatprep.subr.mxu0 %v252_v40 }
  0x23   :  { %661 = vmatprep.subr.mxu1 %v254_v37  ;;  %621 = vmatpush3.msra.mxu0 %v252_v40 }
  0x24   :  { %677 = vmatpush3.msra.mxu1 %v254_v37  ;;  %622 = vmatprep.subr.mxu0 %v251_v41 }
  0x25   :  { %662 = vmatprep.subr.mxu1 %v253_v39  ;;  %623 = vmatpush3.msra.mxu0 %v251_v41 }
  0x26   :  { %678 = vmatpush3.msra.mxu1 %v253_v39  ;;  %624 = vmatprep.subr.mxu0 %v250_v42 }
  0x27   :  { %663 = vmatprep.subr.mxu1 %v252_v40  ;;  %625 = vmatpush3.msra.mxu0 %v250_v42 }
  0x28   :  { %679 = vmatpush3.msra.mxu1 %v252_v40 }
  0x29   :  { %664 = vmatprep.subr.mxu1 %v251_v41 }
  0x2a   :  { %680 = vmatpush3.msra.mxu1 %v251_v41 }
  0x2b   :  { %665 = vmatprep.subr.mxu1 %v250_v42 }
  0x2c   :  { %681 = vmatpush3.msra.mxu1 %v250_v42 }
  0xc8   :  { %v580_v43 = vpop.f32.mrf.mxu0 }
  0xca   :  { %v107_v44 = vpop.f32.mrf.mxu0 }
  0xcb   :  { %626 = vmatprep.mubr.f32.mxu0 %v107_v44 }
  0xcc   :  { %v581_v45 = vpop.f32.mrf.mxu0 }
  0xcd   :  { %v496_v46 = vpack.c.bf16 %v581_v45, %v580_v43 }
  0xce   :  { %v110_v47 = vpop.f32.mrf.mxu0 }
  0xcf   :  { %528 = vst [vmem:[#allocation2 + $0x8] sm:$0xff] %v496_v46   ;;  %v491_v48 = vpack.c.bf16 %v110_v47, %v107_v44  ;;  %627 = vmatmul.mubr.f32.vlgmr.msra.gmra.mxu0 %v110_v47 }
  0xd0   :  { %v584_v49 = vpop.f32.mrf.mxu0  ;;  %629 = vmatprep.mubr.f32.mxu0 %v580_v43 }
  0xd1   :  { %492 = vst [vmem:[#allocation2] sm:$0xff] %v491_v48   ;;  %635 = vmatprep.mubr.f32.mxu1 %v584_v49 }
  0xd2   :  { %v123_v50 = vpop.f32.mrf.mxu0 }
  0xd3   :  { %630 = vmatmul.mubr.f32.gmra.mxu0 %v581_v45 }
  0xd4   :  { %v585_v51 = vpop.f32.mrf.mxu0  ;;  %632 = vmatprep.mubr.f32.mxu0 %v123_v50 }
  0xd5   :  { %v506_v52 = vpack.c.bf16 %v585_v51, %v584_v49  ;;  %636 = vmatmul.mubr.f32.vlgmr.msra.gmra.mxu1 %v585_v51 }
  0xd6   :  { %v126_v53 = vpop.f32.mrf.mxu0 }
  0xd7   :  { %530 = vst [vmem:[#allocation2 + $0x18] sm:$0xff] %v506_v52   ;;  %v501_v54 = vpack.c.bf16 %v126_v53, %v123_v50  ;;  %633 = vmatmul.mubr.f32.gmra.mxu0 %v126_v53 }
  0xd8   :  { %v588_v55 = vpop.f32.mrf.mxu0 }
  0xd9   :  { %529 = vst [vmem:[#allocation2 + $0x10] sm:$0xff] %v501_v54  }
  0xda   :  { %v139_v56 = vpop.f32.mrf.mxu0 }
  0xdb   :  { %638 = vmatprep.mubr.f32.mxu1 %v139_v56 }
  0xdc   :  { %v589_v57 = vpop.f32.mrf.mxu0 }
  0xdd   :  { %v516_v58 = vpack.c.bf16 %v589_v57, %v588_v55 }
  0xde   :  { %v142_v59 = vpop.f32.mrf.mxu0 }
  0xdf   :  { %532 = vst [vmem:[#allocation2 + $0x28] sm:$0xff] %v516_v58   ;;  %v511_v60 = vpack.c.bf16 %v142_v59, %v139_v56  ;;  %639 = vmatmul.mubr.f32.gmra.mxu1 %v142_v59 }
  0xe0   :  { %v592_v61 = vpop.f32.mrf.mxu0  ;;  %641 = vmatprep.mubr.f32.mxu1 %v588_v55 }
  0xe1   :  { %531 = vst [vmem:[#allocation2 + $0x20] sm:$0xff] %v511_v60  }
  0xe2   :  { %v155_v62 = vpop.f32.mrf.mxu0 }
  0xe3   :  { %642 = vmatmul.mubr.f32.gmra.mxu1 %v589_v57 }
  0xe4   :  { %v593_v63 = vpop.f32.mrf.mxu0  ;;  %644 = vmatprep.mubr.f32.mxu1 %v155_v62 }
  0xe5   :  { %v526_v0 = vpack.c.bf16 %v593_v63, %v592_v61 }
  0xe6   :  { %v158_v1 = vpop.f32.mrf.mxu0 }
  0xe7   :  { %534 = vst [vmem:[#allocation2 + $0x38] sm:$0xff] %v526_v0   ;;  %v521_v2 = vpack.c.bf16 %v158_v1, %v155_v62  ;;  %645 = vmatmul.mubr.f32.gmra.mxu1 %v158_v1 }
  0xe8   :  { %647 = vmatprep.mubr.f32.mxu1 %v592_v61 }
  0xe9   :  { %533 = vst [vmem:[#allocation2 + $0x30] sm:$0xff] %v521_v2  }
  0xeb   :  { %648 = vmatmul.mubr.f32.gmra.mxu1 %v593_v63 }
  0xec   :  { %697 = shalt.err (!%p694_p4)
}
  0xed   :  { %s709_s27 = smov 64   ;;  %s710_s28 = smov 4   ;;  %vm411_vm2 = vcmask 15360  }
  0xee   :  { %439 = dma.vmem_to_hbm [thread:$0]  %s434_s25, 1024, %s913_s3, [#allocation3], %s709_s27, %s709_s27, %s710_s28  }
 0x18f   :  { %v628_v3 = vpop.f32.mrf.mxu0 }
 0x190   :  { %413 = vst.msk [vmem:[%s914_s4 + $0x8] sm:$0xff] %vm411_vm2, %v628_v3 }
 0x191   :  { %v332_v4 = vpop.f32.mrf.mxu0 }
 0x192   :  { %412 = vst.msk [vmem:[%s914_s4] sm:$0xff] %vm411_vm2, %v332_v4 }
 0x193   :  { %v631_v5 = vpop.f32.mrf.mxu0 }
 0x194   :  { %415 = vst.msk [vmem:[%s914_s4 + $0x18] sm:$0xff] %vm411_vm2, %v631_v5 }
 0x195   :  { %v342_v6 = vpop.f32.mrf.mxu0  ;;  %v637_v7 = vpop.f32.mrf.mxu1 }
 0x196   :  { %414 = vst.msk [vmem:[%s914_s4 + $0x10] sm:$0xff] %vm411_vm2, %v342_v6  ;;  %419 = vst.msk [vmem:[%s914_s4 + $0x38] sm:$0xff] %vm411_vm2, %v637_v7 }
 0x197   :  { %v634_v8 = vpop.f32.mrf.mxu0  ;;  %v362_v9 = vpop.f32.mrf.mxu1 }
 0x198   :  { %417 = vst.msk [vmem:[%s914_s4 + $0x28] sm:$0xff] %vm411_vm2, %v634_v8  ;;  %418 = vst.msk [vmem:[%s914_s4 + $0x30] sm:$0xff] %vm411_vm2, %v362_v9 }
 0x199   :  { %v352_v10 = vpop.f32.mrf.mxu0 }
 0x19a   :  { %416 = vst.msk [vmem:[%s914_s4 + $0x20] sm:$0xff] %vm411_vm2, %v352_v10 }
 0x19f   :  { %v640_v11 = vpop.f32.mrf.mxu1 }
 0x1a0   :  { %421 = vst.msk [vmem:[%s914_s4 + $0x48] sm:$0xff] %vm411_vm2, %v640_v11 }
 0x1a1   :  { %v372_v12 = vpop.f32.mrf.mxu1 }
 0x1a2   :  { %420 = vst.msk [vmem:[%s914_s4 + $0x40] sm:$0xff] %vm411_vm2, %v372_v12 }
 0x1a3   :  { %v643_v13 = vpop.f32.mrf.mxu1 }
 0x1a4   :  { %423 = vst.msk [vmem:[%s914_s4 + $0x58] sm:$0xff] %vm411_vm2, %v643_v13 }
 0x1a5   :  { %v382_v14 = vpop.f32.mrf.mxu1 }
 0x1a6   :  { %422 = vst.msk [vmem:[%s914_s4 + $0x50] sm:$0xff] %vm411_vm2, %v382_v14 }
 0x1a7   :  { %v646_v15 = vpop.f32.mrf.mxu1 }
 0x1a8   :  { %425 = vst.msk [vmem:[%s914_s4 + $0x68] sm:$0xff] %vm411_vm2, %v646_v15 }
 0x1a9   :  { %v392_v16 = vpop.f32.mrf.mxu1 }
 0x1aa   :  { %424 = vst.msk [vmem:[%s914_s4 + $0x60] sm:$0xff] %vm411_vm2, %v392_v16 }
 0x1ab   :  { %v649_v17 = vpop.f32.mrf.mxu1 }
 0x1ac   :  { %427 = vst.msk [vmem:[%s914_s4 + $0x78] sm:$0xff] %vm411_vm2, %v649_v17 }
 0x1ad   :  { %v402_v18 = vpop.f32.mrf.mxu1 }
 0x1ae   :  { %426 = vst.msk [vmem:[%s914_s4 + $0x70] sm:$0xff] %vm411_vm2, %v402_v18 }
 0x1af   :  { %706 = dma.done.wait [#allocation3], 1024  }
 0x1b0   :  { %707 = vsyncadd [#allocation3], 4294966272 }
 0x1b1   :  { %447 = vsyncpa [#allocation3], 1 }

</bundles_post_ra>
